<compile_context>
chip_gen: v7x
topology: tpu7x:2x2x1
jax: 0.10.0
libtpu: 0.0.40
codegen_flags: <defaults>
</compile_context>

<pallas_src>
import math
from functools import partial

import jax
import jax.numpy as jnp
from jax.experimental import pallas as pl
from jax.experimental.pallas import tpu as pltpu

NEG_BIG = -1e9          # finite "-inf": fully-masked rows average V instead of NaN'ing

_M_TILES = (512, 256, 128, 64, 32, 16, 8)    # token axis (sublane): mult of 8 or full
_N_TILES = (512, 256, 128)                   # lane axis: 256-friendly for v6e/v7x MXU
_K_TILES = (512, 256, 128)                   # contraction axis
_Q_TILES = (256, 128, 64, 32, 16, 8)         # attention q tiles
_KV_TILES = (1024, 512, 256, 128)            # attention kv (flash) tiles


def _choose(dim, candidates):
    """Largest candidate tile that evenly divides `dim`; else the full dim."""
    for c in candidates:
        if dim % c == 0:
            return c
    return dim


_VMEM_LIMIT = None


def _vmem_limit():
    """Generation-aware scoped-VMEM: ~96 MiB on v5e/v6e (128 MiB phys), ~48 MiB on v7x."""
    global _VMEM_LIMIT
    if _VMEM_LIMIT is None:
        try:
            cap = int(pltpu.get_tpu_info().vmem_capacity_bytes)
        except Exception:
            cap = 64 * 1024 * 1024
        _VMEM_LIMIT = min((cap * 3) // 4, 100 * 1024 * 1024)
    return _VMEM_LIMIT


def _mosaic(*sem):
    return pltpu.CompilerParams(dimension_semantics=sem,
                                vmem_limit_bytes=_vmem_limit())


# ----------------------------------------------------------------------------
# Tiled linear kernel:  y = x @ w + b  (optional fused relu); bf16 MXU, f32 acc
# ----------------------------------------------------------------------------
def _linear_kernel(x_ref, w_ref, b_ref, o_ref, acc_ref, *, activation):
    @pl.when(pl.program_id(2) == 0)
    def _():
        acc_ref[...] = jnp.zeros_like(acc_ref)

    acc_ref[...] += jnp.dot(x_ref[...].astype(jnp.bfloat16), w_ref[...],
                            preferred_element_type=jnp.float32)

    @pl.when(pl.program_id(2) == pl.num_programs(2) - 1)
    def _():
        y = acc_ref[...] + b_ref[...].astype(jnp.float32)
        if activation == "relu":
            y = jnp.maximum(y, 0.0)
        o_ref[...] = y.astype(o_ref.dtype)


def linear(x, w, b, activation=None, out_dtype=jnp.float32):
    """x: (M, K) any float; w: (K, N) bf16; b: (N,) f32  ->  (M, N) out_dtype."""
    M, K = x.shape
    N = w.shape[1]
    tm = _choose(M, _M_TILES)
    tn = _choose(N, _N_TILES)
    tk = _choose(K, _K_TILES)
    return pl.pallas_call(
        partial(_linear_kernel, activation=activation),
        out_shape=jax.ShapeDtypeStruct((M, N), out_dtype),
        grid=(M // tm, N // tn, K // tk),
        in_specs=[
            pl.BlockSpec((tm, tk), lambda i, j, k: (i, k)),
            pl.BlockSpec((tk, tn), lambda i, j, k: (k, j)),
            pl.BlockSpec((1, tn), lambda i, j, k: (0, j)),
        ],
        out_specs=pl.BlockSpec((tm, tn), lambda i, j, k: (i, j)),
        scratch_shapes=[pltpu.VMEM((tm, tn), jnp.float32)],
        compiler_params=_mosaic("parallel", "parallel", "arbitrary"),
    )(x, w.astype(jnp.bfloat16), b.reshape(1, N).astype(jnp.float32))


# ----------------------------------------------------------------------------
# Fused FFN kernel:  y = relu(x @ W1 + b1) @ W2 + b2
# Output-column tile = full E -> the first GEMM is computed exactly once per (i, f).
# ----------------------------------------------------------------------------
def _ffn_kernel(x_ref, w1_ref, b1_ref, w2_ref, b2_ref, o_ref, acc_ref):
    @pl.when(pl.program_id(1) == 0)
    def _():
        acc_ref[...] = jnp.zeros_like(acc_ref)

    h = jnp.dot(x_ref[...].astype(jnp.bfloat16), w1_ref[...],
                preferred_element_type=jnp.float32)
    h = jnp.maximum(h + b1_ref[...].astype(jnp.float32), 0.0)
    acc_ref[...] += jnp.dot(h.astype(jnp.bfloat16), w2_ref[...],
                            preferred_element_type=jnp.float32)

    @pl.when(pl.program_id(1) == pl.num_programs(1) - 1)
    def _():
        o_ref[...] = (acc_ref[...] + b2_ref[...].astype(jnp.float32)).astype(o_ref.dtype)


def ffn(x, w1, b1, w2, b2, out_dtype=jnp.float32):
    """x: (M, E); w1: (E, FF) bf16; w2: (FF, E) bf16  ->  (M, E) out_dtype."""
    M, E = x.shape
    FF = w1.shape[1]
    tm = _choose(M, _M_TILES)
    tf = _choose(FF, _K_TILES)
    return pl.pallas_call(
        _ffn_kernel,
        out_shape=jax.ShapeDtypeStruct((M, E), out_dtype),
        grid=(M // tm, FF // tf),
        in_specs=[
            pl.BlockSpec((tm, E), lambda i, f: (i, 0)),    # fetched once per i
            pl.BlockSpec((E, tf), lambda i, f: (0, f)),
            pl.BlockSpec((1, tf), lambda i, f: (0, f)),
            pl.BlockSpec((tf, E), lambda i, f: (f, 0)),
            pl.BlockSpec((1, E), lambda i, f: (0, 0)),
        ],
        out_specs=pl.BlockSpec((tm, E), lambda i, f: (i, 0)),
        scratch_shapes=[pltpu.VMEM((tm, E), jnp.float32)],
        compiler_params=_mosaic("parallel", "arbitrary"),
    )(x, w1.astype(jnp.bfloat16), b1.reshape(1, FF).astype(jnp.float32),
      w2.astype(jnp.bfloat16), b2.reshape(1, E).astype(jnp.float32))


# ----------------------------------------------------------------------------
# LayerNorm kernels (plain, and fused residual-add + LayerNorm)
# ----------------------------------------------------------------------------
def _ln_kernel(x_ref, g_ref, b_ref, o_ref, *, eps):
    x = x_ref[...].astype(jnp.float32)
    mean = jnp.mean(x, axis=-1, keepdims=True)
    var = jnp.mean(jnp.square(x - mean), axis=-1, keepdims=True)
    y = (x - mean) * jax.lax.rsqrt(var + eps) * g_ref[...] + b_ref[...]
    o_ref[...] = y.astype(o_ref.dtype)


def _add_ln_kernel(x_ref, r_ref, g_ref, b_ref, o_ref, *, eps):
    x = x_ref[...].astype(jnp.float32) + r_ref[...].astype(jnp.float32)
    mean = jnp.mean(x, axis=-1, keepdims=True)
    var = jnp.mean(jnp.square(x - mean), axis=-1, keepdims=True)
    y = (x - mean) * jax.lax.rsqrt(var + eps) * g_ref[...] + b_ref[...]
    o_ref[...] = y.astype(o_ref.dtype)


def layernorm(x, gamma, beta, eps=1e-5):
    M, E = x.shape
    tm = _choose(M, _M_TILES)
    return pl.pallas_call(
        partial(_ln_kernel, eps=eps),
        out_shape=jax.ShapeDtypeStruct((M, E), jnp.float32),
        grid=(M // tm,),
        in_specs=[
            pl.BlockSpec((tm, E), lambda i: (i, 0)),
            pl.BlockSpec((1, E), lambda i: (0, 0)),
            pl.BlockSpec((1, E), lambda i: (0, 0)),
        ],
        out_specs=pl.BlockSpec((tm, E), lambda i: (i, 0)),
        compiler_params=_mosaic("parallel"),
    )(x, gamma.reshape(1, E), beta.reshape(1, E))


def add_layernorm(x, resid, gamma, beta, eps=1e-5):
    """LayerNorm(x + resid): one HBM pass instead of add + separate LN."""
    M, E = x.shape
    tm = _choose(M, _M_TILES)
    return pl.pallas_call(
        partial(_add_ln_kernel, eps=eps),
        out_shape=jax.ShapeDtypeStruct((M, E), jnp.float32),
        grid=(M // tm,),
        in_specs=[
            pl.BlockSpec((tm, E), lambda i: (i, 0)),
            pl.BlockSpec((tm, E), lambda i: (i, 0)),
            pl.BlockSpec((1, E), lambda i: (0, 0)),
            pl.BlockSpec((1, E), lambda i: (0, 0)),
        ],
        out_specs=pl.BlockSpec((tm, E), lambda i: (i, 0)),
        compiler_params=_mosaic("parallel"),
    )(x, resid, gamma.reshape(1, E), beta.reshape(1, E))


# ----------------------------------------------------------------------------
# Multi-head attention kernel:
#   grid (batch, q-tile, kv-tile); flash-style running max/sum over kv tiles;
#   all heads handled per invocation; causal mask via in-kernel iota;
#   (N, T, E) layout in and out -> lane-dense E-wide stores, no transposes.
# ----------------------------------------------------------------------------
def _mha_kernel(q_ref, k_ref, v_ref, kp_ref, o_ref, m_sc, l_sc, acc_sc,
                *, scale, nhead, causal, q_tile, k_tile):
    qi = pl.program_id(1)
    ki = pl.program_id(2)

    @pl.when(ki == 0)
    def _():
        m_sc[...] = jnp.full(m_sc.shape, float("-inf"), jnp.float32)
        l_sc[...] = jnp.zeros(l_sc.shape, jnp.float32)
        acc_sc[...] = jnp.zeros(acc_sc.shape, jnp.float32)

    q = q_ref[0]                                    # (tq, E) bf16
    k = k_ref[0]                                    # (tk, E) bf16
    v = v_ref[0]                                    # (tk, E) bf16
    bias = kp_ref[0].astype(jnp.float32)            # (1, tk) key-padding bias

    if causal:
        q_pos = qi * q_tile + jax.lax.broadcasted_iota(jnp.int32, (q_tile, k_tile), 0)
        k_pos = ki * k_tile + jax.lax.broadcasted_iota(jnp.int32, (q_tile, k_tile), 1)
        bias = bias + jnp.where(k_pos > q_pos, NEG_BIG, 0.0)

    emb = q.shape[-1]
    d = emb // nhead

    for h in range(nhead):                          # static loop, all heads per block
        lo = h * d
        qh = q[:, lo:lo + d]
        kh = k[:, lo:lo + d]
        vh = v[:, lo:lo + d]
        s = jax.lax.dot_general(qh, kh, (((1,), (1,)), ((), ())),
                                preferred_element_type=jnp.float32)
        s = s * scale + bias                        # (tq, tk)
        m_prev = m_sc[h]                            # (tq, 1)
        m_new = jnp.maximum(m_prev, jnp.max(s, axis=-1, keepdims=True))
        alpha = jnp.exp(m_prev - m_new)
        p = jnp.exp(s - m_new)
        l_sc[h] = alpha * l_sc[h] + jnp.sum(p, axis=-1, keepdims=True)
        acc_sc[:, lo:lo + d] = alpha * acc_sc[:, lo:lo + d] + jax.lax.dot_general(
            p.astype(vh.dtype), vh, (((1,), (0,)), ((), ())),
            preferred_element_type=jnp.float32)
        m_sc[h] = m_new

    @pl.when(ki == pl.num_programs(2) - 1)
    def _():
        for h in range(nhead):
            lo = h * d
            inv = pl.reciprocal(l_sc[h], approx=True)      # (tq, 1), EUP slot
            acc_sc[:, lo:lo + d] = acc_sc[:, lo:lo + d] * inv
        o_ref[0] = acc_sc[...].astype(o_ref.dtype)         # single lane-dense store


def attention(q_arr, k_arr, v_arr, kpad_bias, *, emb, nhead, scale, causal,
              q_col=0, k_col=0, v_col=0, out_dtype=jnp.bfloat16):
    """q_arr: (N, Tq, *); k_arr/v_arr: (N, Tk, *); the E-wide q/k/v slabs live at
    column-block (q_col/k_col/v_col) of width `emb`.  kpad_bias: (N, 1, Tk) f32.
    Returns (N, Tq, emb) out_dtype."""
    Nb, Tq, _ = q_arr.shape
    Tk = k_arr.shape[1]
    tq = _choose(Tq, _Q_TILES)
    tk = _choose(Tk, _KV_TILES)
    return pl.pallas_call(
        partial(_mha_kernel, scale=scale, nhead=nhead, causal=causal,
                q_tile=tq, k_tile=tk),
        out_shape=jax.ShapeDtypeStruct((Nb, Tq, emb), out_dtype),
        grid=(Nb, Tq // tq, Tk // tk),
        in_specs=[
            pl.BlockSpec((1, tq, emb), lambda b, qi, ki, c=q_col: (b, qi, c)),
            pl.BlockSpec((1, tk, emb), lambda b, qi, ki, c=k_col: (b, ki, c)),
            pl.BlockSpec((1, tk, emb), lambda b, qi, ki, c=v_col: (b, ki, c)),
            pl.BlockSpec((1, 1, tk), lambda b, qi, ki: (b, 0, ki)),
        ],
        out_specs=pl.BlockSpec((1, tq, emb), lambda b, qi, ki: (b, qi, 0)),
        scratch_shapes=[
            pltpu.VMEM((nhead, tq, 1), jnp.float32),   # running max per head
            pltpu.VMEM((nhead, tq, 1), jnp.float32),   # running sum per head
            pltpu.VMEM((tq, emb), jnp.float32),        # f32 output accumulator
        ],
        compiler_params=_mosaic("parallel", "parallel", "arbitrary"),
    )(q_arr, k_arr, v_arr, kpad_bias)


# ----------------------------------------------------------------------------
# Transformer built on the kernels (torch.nn semantics, eval mode, batch-first
# internal layout to keep attention I/O lane-dense and transpose-free)
# ----------------------------------------------------------------------------
def multi_head_attention(query, kv_src, p, *, nhead, key_padding_mask, causal, is_self):
    """query: (N, Tq, E); kv_src: (N, Tk, E) -> (N*Tq, E) f32 (after out-proj)."""
    Nb, Tq, E = query.shape
    Tk = kv_src.shape[1]
    d = E // nhead
    w, b = p["in_proj_w"], p["in_proj_b"]

    if is_self:                                   # fused QKV matmul, bf16 out
        qkv = linear(query.reshape(Nb * Tq, E), w, b,
                     out_dtype=jnp.bfloat16).reshape(Nb, Tq, 3 * E)
        if E % 128 == 0:                          # consume in place via column blocks
            q_arr, k_arr, v_arr = qkv, qkv, qkv
            cols = (0, 1, 2)
        else:                                     # fallback: contiguous splits
            q_arr, k_arr, v_arr = jnp.split(qkv, 3, axis=-1)
            cols = (0, 0, 0)
    else:                                         # cross-attention: Q and fused KV
        q_arr = linear(query.reshape(Nb * Tq, E), w[:, :E], b[:E],
                       out_dtype=jnp.bfloat16).reshape(Nb, Tq, E)
        kv = linear(kv_src.reshape(Nb * Tk, E), w[:, E:], b[E:],
                    out_dtype=jnp.bfloat16).reshape(Nb, Tk, 2 * E)
        if E % 128 == 0:
            k_arr, v_arr = kv, kv
            cols = (0, 0, 1)
        else:
            k_arr, v_arr = jnp.split(kv, 2, axis=-1)
            cols = (0, 0, 0)

    if key_padding_mask is not None:
        kp = jnp.where(key_padding_mask, NEG_BIG, 0.0).astype(jnp.float32)[:, None, :]
    else:
        kp = jnp.zeros((Nb, 1, Tk), jnp.float32)

    ctx = attention(q_arr, k_arr, v_arr, kp, emb=E, nhead=nhead,
                    scale=1.0 / math.sqrt(d), causal=causal,
                    q_col=cols[0], k_col=cols[1], v_col=cols[2])   # (N, Tq, E) bf16
    return linear(ctx.reshape(Nb * Tq, E), p["out_proj_w"], p["out_proj_b"])


def encoder_layer(x, p, key_pad, nhead):
    Nb, S, E = x.shape
    x2d = x.reshape(Nb * S, E)
    attn = multi_head_attention(x, x, p["self_attn"], nhead=nhead,
                                key_padding_mask=key_pad, causal=False, is_self=True)
    y = add_layernorm(attn, x2d, p["norm1_w"], p["norm1_b"])
    ff = ffn(y, p["linear1_w"], p["linear1_b"], p["linear2_w"], p["linear2_b"])
    y = add_layernorm(ff, y, p["norm2_w"], p["norm2_b"])
    return y.reshape(Nb, S, E)


def decoder_layer(x, memory, p, tgt_pad, mem_pad, nhead):
    Nb, T, E = x.shape
    x2d = x.reshape(Nb * T, E)
    sa = multi_head_attention(x, x, p["self_attn"], nhead=nhead,
                              key_padding_mask=tgt_pad, causal=True, is_self=True)
    y = add_layernorm(sa, x2d, p["norm1_w"], p["norm1_b"])
    ca = multi_head_attention(y.reshape(Nb, T, E), memory, p["cross_attn"], nhead=nhead,
                              key_padding_mask=mem_pad, causal=False, is_self=False)
    y = add_layernorm(ca, y, p["norm2_w"], p["norm2_b"])
    ff = ffn(y, p["linear1_w"], p["linear1_b"], p["linear2_w"], p["linear2_b"])
    y = add_layernorm(ff, y, p["norm3_w"], p["norm3_b"])
    return y.reshape(Nb, T, E)


def make_pos_embedding(emb_size, maxlen=5000):
    den = jnp.exp(-jnp.arange(0, emb_size, 2, dtype=jnp.float32)
                  * (math.log(10000.0) / emb_size))
    pos = jnp.arange(maxlen, dtype=jnp.float32)[:, None]
    pe = jnp.zeros((maxlen, emb_size), jnp.float32)
    pe = pe.at[:, 0::2].set(jnp.sin(pos * den))
    pe = pe.at[:, 1::2].set(jnp.cos(pos * den))
    return pe[:, None, :]                           # (maxlen, 1, emb_size)


def seq2seq_transformer_forward(params, src, trg, src_mask, tgt_mask,
                                src_padding_mask, tgt_padding_mask,
                                memory_key_padding_mask):
    E = params["hidden_size"]
    nhead = params["nhead"]
    pe = params["pos_embedding"]

    # token embedding * sqrt(E) + positional encoding (dropout = identity in eval)
    src_emb = params["src_emb"][src] * math.sqrt(E) + pe[: src.shape[0]]   # (S, N, E)
    tgt_emb = params["tgt_emb"][trg] * math.sqrt(E) + pe[: trg.shape[0]]   # (T, N, E)
    # single transpose to the batch-first layout used by all kernels below
    src_emb = src_emb.transpose(1, 0, 2)            # (N, S, E)
    tgt_emb = tgt_emb.transpose(1, 0, 2)            # (N, T, E)

    # TODO(synk): src_mask / tgt_mask float biases are honored as "zero" and
    #             "standard causal" respectively (generated in-kernel); arbitrary
    #             float attention masks are not streamed to the attention kernel.

    memory = src_emb
    for lp in params["encoder_layers"]:
        memory = encoder_layer(memory, lp, src_padding_mask, nhead)
    Nb, S, _ = memory.shape
    memory = layernorm(memory.reshape(Nb * S, E),
                       params["encoder_norm_w"], params["encoder_norm_b"]).reshape(Nb, S, E)

    out = tgt_emb
    for lp in params["decoder_layers"]:
        out = decoder_layer(out, memory, lp, tgt_padding_mask,
                            memory_key_padding_mask, nhead)
    Nb, T, _ = out.shape
    out = layernorm(out.reshape(Nb * T, E),
                    params["decoder_norm_w"], params["decoder_norm_b"])

    logits = linear(out, params["generator_w"], params["generator_b"])
    # back to PyTorch's seq-first output layout: (T, N, V)
    return logits.reshape(Nb, T, params["tgt_vocab_size"]).transpose(1, 0, 2)


# ----------------------------------------------------------------------------
# Deterministic parameter init (weights pre-transposed to (K, N), stored bf16)
# ----------------------------------------------------------------------------
def init_params(key, num_encoder_layers, num_decoder_layers, hidden_size, nhead,
                src_vocab_size, tgt_vocab_size, dim_feedforward):
    keys = iter(jax.random.split(key, 256))

    def dense(shape, dtype=jnp.bfloat16):
        return (jax.random.normal(next(keys), shape, jnp.float32) * 0.02).astype(dtype)

    def mha():
        return dict(
            in_proj_w=dense((hidden_size, 3 * hidden_size)),      # (E, 3E) pre-transposed
            in_proj_b=jnp.zeros((3 * hidden_size,), jnp.float32),
            out_proj_w=dense((hidden_size, hidden_size)),          # (E, E)  pre-transposed
            out_proj_b=jnp.zeros((hidden_size,), jnp.float32),
        )

    def enc_layer():
        return dict(
            self_attn=mha(),
            linear1_w=dense((hidden_size, dim_feedforward)),        # (E, FF) pre-transposed
            linear1_b=jnp.zeros((dim_feedforward,), jnp.float32),
            linear2_w=dense((dim_feedforward, hidden_size)),        # (FF, E) pre-transposed
            linear2_b=jnp.zeros((hidden_size,), jnp.float32),
            norm1_w=jnp.ones((hidden_size,), jnp.float32),
            norm1_b=jnp.zeros((hidden_size,), jnp.float32),
            norm2_w=jnp.ones((hidden_size,), jnp.float32),
            norm2_b=jnp.zeros((hidden_size,), jnp.float32),
        )

    def dec_layer():
        d = enc_layer()
        d["cross_attn"] = mha()
        d["norm3_w"] = jnp.ones((hidden_size,), jnp.float32)
        d["norm3_b"] = jnp.zeros((hidden_size,), jnp.float32)
        return d

    return dict(
        hidden_size=hidden_size,
        nhead=nhead,
        tgt_vocab_size=tgt_vocab_size,
        src_emb=dense((src_vocab_size, hidden_size), jnp.float32),
        tgt_emb=dense((tgt_vocab_size, hidden_size), jnp.float32),
        pos_embedding=make_pos_embedding(hidden_size),
        encoder_layers=[enc_layer() for _ in range(num_encoder_layers)],
        decoder_layers=[dec_layer() for _ in range(num_decoder_layers)],
        encoder_norm_w=jnp.ones((hidden_size,), jnp.float32),
        encoder_norm_b=jnp.zeros((hidden_size,), jnp.float32),
        decoder_norm_w=jnp.ones((hidden_size,), jnp.float32),
        decoder_norm_b=jnp.zeros((hidden_size,), jnp.float32),
        generator_w=dense((hidden_size, tgt_vocab_size)),           # (E, V) pre-transposed
        generator_b=jnp.zeros((tgt_vocab_size,), jnp.float32),
    )


# ----------------------------------------------------------------------------
if __name__ == "__main__":
    # small shapes: src/tgt seq = 16, batch = 2, hidden = 128, nhead = 4, ff = 256
    S, T, N = 16, 16, 2
    HIDDEN, NHEAD, FF = 128, 4, 256
    SRC_VOCAB, TGT_VOCAB = 40, 48
    N_ENC, N_DEC = 2, 2

    root = jax.random.PRNGKey(0)
    pkey, skey, tkey = jax.random.split(root, 3)

    params = init_params(pkey, N_ENC, N_DEC, HIDDEN, NHEAD,
                         SRC_VOCAB, TGT_VOCAB, FF)

    src = jax.random.randint(skey, (S, N), 0, SRC_VOCAB, dtype=jnp.int32)
    trg = jax.random.randint(tkey, (T, N), 0, TGT_VOCAB, dtype=jnp.int32)

    src_mask = jnp.zeros((S, S), jnp.float32)
    tgt_mask = jnp.where(jnp.triu(jnp.ones((T, T), dtype=bool), k=1),
                         -jnp.inf, 0.0).astype(jnp.float32)        # causal (PyTorch style)
    # mark the last source position of every sentence as padding (exercises kpad path)
    src_padding_mask = jnp.zeros((N, S), dtype=bool).at[:, -1].set(True)
    tgt_padding_mask = jnp.zeros((N, T), dtype=bool)
    memory_key_padding_mask = src_padding_mask

    logits = seq2seq_transformer_forward(
        params, src, trg, src_mask, tgt_mask,
        src_padding_mask, tgt_padding_mask, memory_key_padding_mask)
    jax.block_until_ready(logits)

    assert logits.shape == (T, N, TGT_VOCAB)
    assert bool(jnp.all(jnp.isfinite(logits)))
    print("KERNEL_OK")
</pallas_src>

<mosaic_0001>
module attributes {stable_mosaic.version = 11 : i64} {
  func.func @_linear_kernel(%arg0: i32, %arg1: i32, %arg2: i32, %arg3: memref<32x128xf32, #tpu.memory_space<vmem>>, %arg4: memref<128x128xbf16, #tpu.memory_space<vmem>>, %arg5: memref<1x128xf32, #tpu.memory_space<vmem>>, %arg6: memref<32x128xbf16, #tpu.memory_space<vmem>>, %arg7: memref<32x128xf32, #tpu.memory_space<vmem>>) attributes {dimension_semantics = [#tpu.dimension_semantics<parallel>, #tpu.dimension_semantics<parallel>, #tpu.dimension_semantics<arbitrary>], iteration_bounds = array<i64: 1, 3, 1>, scalar_prefetch = 0 : i64, scratch_operands = 1 : i64, tpu.core_type = #tpu.core_type<tc>, window_params = [{transform_indices = @transform_0, window_bounds = array<i64: 32, 128>}, {transform_indices = @transform_1, window_bounds = array<i64: 128, 128>}, {transform_indices = @transform_2, window_bounds = array<i64: 1, 128>}, {transform_indices = @transform_3, window_bounds = array<i64: 32, 128>}]} {
    %c0_i32 = arith.constant 0 : i32
    %0 = arith.cmpi eq, %arg2, %c0_i32 : i32
    %1 = arith.extui %0 : i1 to i32
    %c0_i32_0 = arith.constant 0 : i32
    %2 = arith.cmpi ne, %1, %c0_i32_0 : i32
    scf.if %2 {
      %cst_10 = arith.constant 0.000000e+00 : f32
      %13 = vector.broadcast %cst_10 : f32 to vector<32x128xf32>
      %c0_11 = arith.constant 0 : index
      %c0_12 = arith.constant 0 : index
      %14 = vector.load %arg7[%c0_11, %c0_12] : memref<32x128xf32, #tpu.memory_space<vmem>>, vector<32x128xf32>
      tpu.vector_store %arg7[%c0_11, %c0_12], %13 {strides = array<i32>} : memref<32x128xf32, #tpu.memory_space<vmem>>, vector<32x128xf32>,
    } else {
    }
    %c0 = arith.constant 0 : index
    %c0_1 = arith.constant 0 : index
    %3 = vector.load %arg7[%c0, %c0_1] : memref<32x128xf32, #tpu.memory_space<vmem>>, vector<32x128xf32>
    %c0_2 = arith.constant 0 : index
    %c0_3 = arith.constant 0 : index
    %4 = vector.load %arg3[%c0_2, %c0_3] : memref<32x128xf32, #tpu.memory_space<vmem>>, vector<32x128xf32>
    %5 = arith.truncf %4 : vector<32x128xf32> to vector<32x128xbf16>
    %c0_4 = arith.constant 0 : index
    %c0_5 = arith.constant 0 : index
    %6 = vector.load %arg4[%c0_4, %c0_5] : memref<128x128xbf16, #tpu.memory_space<vmem>>, vector<128x128xbf16>
    %cst = arith.constant dense<0.000000e+00> : vector<32x128xf32>
    %7 = tpu.matmul %5, %6, %cst {dimension_numbers = #tpu.dot_dimension_numbers<[1], [0], [0], [1], [0, 0, 1, 1], [], []>} : vector<32x128xbf16>, vector<128x128xbf16>, vector<32x128xf32> -> vector<32x128xf32>
    %8 = arith.addf %3, %7 : vector<32x128xf32>
    %c0_6 = arith.constant 0 : index
    %c0_7 = arith.constant 0 : index
    %9 = vector.load %arg7[%c0_6, %c0_7] : memref<32x128xf32, #tpu.memory_space<vmem>>, vector<32x128xf32>
    tpu.vector_store %arg7[%c0_6, %c0_7], %8 {strides = array<i32>} : memref<32x128xf32, #tpu.memory_space<vmem>>, vector<32x128xf32>,
    %c0_i32_8 = arith.constant 0 : i32
    %10 = arith.cmpi eq, %arg2, %c0_i32_8 : i32
    %11 = arith.extui %10 : i1 to i32
    %c0_i32_9 = arith.constant 0 : i32
    %12 = arith.cmpi ne, %11, %c0_i32_9 : i32
    scf.if %12 {
      %c0_10 = arith.constant 0 : index
      %c0_11 = arith.constant 0 : index
      %13 = vector.load %arg7[%c0_10, %c0_11] : memref<32x128xf32, #tpu.memory_space<vmem>>, vector<32x128xf32>
      %c0_12 = arith.constant 0 : index
      %c0_13 = arith.constant 0 : index
      %14 = vector.load %arg5[%c0_12, %c0_13] : memref<1x128xf32, #tpu.memory_space<vmem>>, vector<1x128xf32>
      %15 = vector.broadcast %14 : vector<1x128xf32> to vector<32x128xf32>
      %16 = arith.addf %13, %15 : vector<32x128xf32>
      %17 = arith.truncf %16 : vector<32x128xf32> to vector<32x128xbf16>
      %c0_14 = arith.constant 0 : index
      %c0_15 = arith.constant 0 : index
      %18 = vector.load %arg6[%c0_14, %c0_15] : memref<32x128xbf16, #tpu.memory_space<vmem>>, vector<32x128xbf16>
      tpu.vector_store %arg6[%c0_14, %c0_15], %17 {strides = array<i32>} : memref<32x128xbf16, #tpu.memory_space<vmem>>, vector<32x128xbf16>,
    } else {
    }
    return
  }
  func.func @transform_0(%arg0: i32, %arg1: i32, %arg2: i32) -> (i32, i32) {
    %c0_i32 = arith.constant 0 : i32
    return %arg0, %arg2 : i32, i32
  }
  func.func @transform_1(%arg0: i32, %arg1: i32, %arg2: i32) -> (i32, i32) {
    %c0_i32 = arith.constant 0 : i32
    return %arg2, %arg1 : i32, i32
  }
  func.func @transform_2(%arg0: i32, %arg1: i32, %arg2: i32) -> (i32, i32) {
    %c0_i32 = arith.constant 0 : i32
    %c0_i32_0 = arith.constant 0 : i32
    return %c0_i32, %arg1 : i32, i32
  }
  func.func @transform_3(%arg0: i32, %arg1: i32, %arg2: i32) -> (i32, i32) {
    %c0_i32 = arith.constant 0 : i32
    return %arg0, %arg1 : i32, i32
  }
}

</mosaic_0001>

<bundles_post_ra>
// kernel: tpu_custom_call.1
= control target key start
LH: loop header
LB: loop body
LE: loop exit
PB: predicated region body
PF: predicated region fallthrough
CT: control target
= control target key end

     0   :  { %8 = vsyncpa [#allocation4], 0  ;;  %s1120_s0 = inlined_call_operand.hbm [shape: f32[32,128], index: 0, kind: input, shape index: {}]   ;;  %s1121_s1 = inlined_call_operand.hbm [shape: bf16[128,384], index: 1, kind: input, shape index: {}]   ;;  %s1122_s2 = inlined_call_operand.vmem [shape: f32[1,384], index: 2, kind: input, shape index: {}]   ;;  %s1123_s3 = inlined_call_operand.hbm [shape: bf16[32,384], index: 3, kind: output, shape index: {}]  }
   0x1   :  { %9 = vsyncpa [#allocation7], 0 }
   0x2   :  { %11 = vsyncpa [#allocation7 + $0x1], 0 }
   0x3   :  { %12 = vsyncpa [#allocation5], 0 }
   0x4   :  { %14 = vsyncpa [#allocation5 + $0x1], 0  ;;  %s903_s12 = smov 0   ;;  %s905_s13 = smov 0  }
   0x5   :  { %s907_s14 = smov 0   ;;  %s909_s15 = smov 0  }
   0x6   :  { %s911_s16 = smov 0   ;;  %s913_s17 = smov 0  }
   0x7 LB: > { %s564_s18 = sadd.s32 4294967295, %s870_s17   ;;  %s565_s19 = sadd.s32 4294967294, %s870_s17   ;;  %s870_s17 = sphi %s913_s17, %s20_s17   ;;  %s866_s16 = sphi %s911_s16, %s1148_s16   ;;  %s862_s15 = sphi %s909_s15, %s1147_s15   ;;  %s858_s14 = sphi %s907_s14, %s1146_s14   ;;  %s854_s13 = sphi %s905_s13, %s1145_s13   ;;  %s850_s12 = sphi %s903_s12, %s1144_s12  }
   0x8   : > { %p83_p0 = scmp.ne.s32.totalorder %s858_s14, %s854_s13  ;;  %p84_p1 = scmp.eq.s32.totalorder %s870_s17, 0 }
   0x9   : > { %p89_p2 = scmp.ne.s32.totalorder %s854_s13, %s850_s12  ;;  %p940_p3 = scmp.eq.s32.totalorder %s564_s18, 0 }
   0xa   : > { %p944_p4 = por %p84_p1, %p83_p0  ;;  %p141_p5 = scmp.eq.s32.totalorder %s564_s18, 2 }
   0xb   : > { %s1130_s20 = scalar_select %p940_p3, 1, 0 }
   0xc   : > { %p950_p6 = por %p940_p3, %p89_p2  ;;  %p147_p7 = scmp.eq.s32.totalorder %s565_s19, 2 }
   0xd   : > { %p954_p8 = por %p141_p5, %p83_p0  ;;  %p566_p9 = scmp.ge.s32.totalorder %s870_s17, 1 }
   0xe   : > { %s1132_s22 = scalar_select %p950_p6, 1, 0 }
   0xf   : > { %s1133_s23 = scalar_select %p954_p8, 1, 0 }
  0x10   : > { %p959_p10 = por %p147_p7, %p89_p2  ;;  %p154_p11 = scmp.lt.s32.totalorder %s870_s17, 4 }
  0x11   : > { %s872_s26 = smov [#allocation3]   ;;  %p658_p0 = scmp.lt.s32.totalorder %s870_s17, 3 }
  0x12   : > { %s1134_s24 = scalar_select %p959_p10, 1, 0 }
  0x13   : > { %p964_p12 = pnand %p566_p9, %p154_p11  ;;  %s170_s27 = sshll.u32 %s872_s26, 4  ;;  %s171_s27 = int_to_ptr.vmem [resolvable:$true] %s170_s27 }
  0x14   : > { %p979_p2 = pnand %p658_p0, %p944_p4  ;;  %s35_s30 = sadd.s32 1, %s866_s16 }
  0x15   : > { %s1135_s25 = scalar_select %p964_p12, 1, 0 }
  0x16   : > { %p645_p13 = pneg %p964_p12  ;;  %s726_s6 = scalar_lea.hbm %s1120_s0, 512 }
  0x17   : > { %s1137_s29 = scalar_select %p979_p2, 1, 0 }
  0x18   : > { %p973_p1 = pnand %p645_p13, %p940_p3  ;;  %p727_p5 = scmp.ne.s32.totalorder %s1120_s0, %s726_s6 }
  0x19   : > { %p733_p4 = scmp.lt.u32.totalorder %s726_s6, %s1120_s0 }
  0x1a   : > { %p728_p7 = pneg %p973_p1 }
  0x1c   : > { %p729_p9 = pnand %p728_p7, %p727_p5 }
  0x1e   : > { %p730_p11 = pneg %p729_p9 }
  0x20   : > { %p735_p13 = pnand %p733_p4, %p730_p11 }
  0x22   : > { %738 = shalt.err (!%p735_p13)
}
  0x23   : > { %s739_s11 = scalar_lea.vmem %s171_s27, 512  ;;  %p747_p6 = scmp.lt.s32.totalorder %s171_s27, %s171_s27 }
  0x24   : > { %p740_p0 = scmp.ne.s32.totalorder %s171_s27, %s739_s11  ;;  %p748_p3 = scmp.lt.s32.totalorder %s739_s11, %s739_s11 }
  0x26   : > { %p742_p10 = pnand %p740_p0, %p728_p7  ;;  %p749_p12 = por %p748_p3, %p747_p6 }
  0x28   : > { %p743_p8 = pneg %p742_p10 }
  0x2a   : > { %p750_p2 = pnand %p749_p12, %p743_p8 }
  0x2c   : > { %753 = shalt.err (!%p750_p2)
}
  0x2d   : > { %s873_s18 = smov 128   ;;  %s874_s19 = smov 8  }
  0x2e   : > { %648 = dma.hbm_to_vmem [thread:$0]  (!%p973_p1), %s1120_s0, 512, %s171_s27, [#allocation4], %s873_s18, %s873_s18, %s874_s19  }
  0x2f   : > { %p37_p5 = scmp.ge.s32.totalorder %s35_s30, 3  ;;  %s76_s4 = sadd.s32 1, %s858_s14 }
  0x30   : > { %s184_s5 = sand.u32 1, %s858_s14   ;;  %s570_s8 = sshll.u32 %s866_s16, 6 }
  0x31   : > { %s1150_s30 = smov (%p37_p5, %s35_s30), 0  ;;  %s569_s6 = sshll.u32 %s184_s5, 6 }
  0x32   : > { %s72_s7 = ssub.s32 %s866_s16, %s1150_s30  ;;  %s1010_s28 = scalar_lea.hbm %s1121_s1, %s570_s8 }
  0x33   : > { %p74_p3 = scmp.eq.s32.totalorder %s72_s7, 0  ;;  %s188_s27 = scalar_lea.vmem [#allocation6], %s569_s6 }
  0x34   : > { %s197_s11 = sshll.u32 %s188_s27, 4  ;;  %s1017_s19 = scalar_lea.sflag [#allocation7], %s184_s5  ;;  %s1015_s11 = int_to_ptr.vmem [resolvable:$true] %s197_s11 }
  0x35   : > { %s1013_s18 = scalar_select %p74_p3, %s858_s14, %s76_s4  }
  0x36   : > { %s754_s21 = scalar_lea.hbm %s1010_s28, 1024  ;;  %p1138_p8 = scmp.ne.s32.totalorder %s1137_s29, 0 }
  0x37   : > { %p755_p6 = scmp.ne.s32.totalorder %s1010_s28, %s754_s21  ;;  %s759_s8 = scalar_lea.hbm %s1121_s1, 3072 }
  0x38   : > { %p756_p10 = pneg %p1138_p8  ;;  %p760_p2 = scmp.lt.u32.totalorder %s1010_s28, %s1121_s1 }
  0x39   : > { %p761_p7 = scmp.lt.u32.totalorder %s759_s8, %s754_s21  ;;  %p763_p11 = scmp.lt.u32.totalorder %s754_s21, %s1010_s28 }
  0x3a   : > { %p757_p12 = pnand %p756_p10, %p755_p6 }
  0x3b   : > { %p762_p9 = por %p761_p7, %p760_p2 }
  0x3c   : > { %p758_p1 = pneg %p757_p12 }
  0x3d   : > { %p764_p4 = por %p763_p11, %p762_p9 }
  0x3f   : > { %p765_p13 = pnand %p764_p4, %p758_p1 }
  0x41   : > { %768 = shalt.err (!%p765_p13)
}
  0x42   : > { %s769_s4 = scalar_lea.vmem %s1015_s11, 1024  ;;  %s875_s5 = smov [#allocation6]  }
  0x43   : > { %p770_p0 = scmp.ne.s32.totalorder %s1015_s11, %s769_s4  ;;  %s774_s10 = sshll.u32 %s875_s5, 4  ;;  %s775_s10 = int_to_ptr.vmem [resolvable:$false] %s774_s10 }
  0x44   : > { %s776_s27 = scalar_lea.vmem %s775_s10, 2048  ;;  %p777_p6 = scmp.lt.s32.totalorder %s1015_s11, %s775_s10 }
  0x45   : > { %p772_p5 = pnand %p770_p0, %p756_p10  ;;  %p778_p12 = scmp.lt.s32.totalorder %s776_s27, %s769_s4 }
  0x47   : > { %p773_p3 = pneg %p772_p5  ;;  %p779_p2 = por %p778_p12, %p777_p6 }
  0x49   : > { %p780_p7 = pnand %p779_p2, %p773_p3 }
  0x4b   : > { %783 = shalt.err (!%p780_p7)
}
  0x4c   : > { %s876_s21 = smov 192   ;;  %s877_s26 = smov 64  }
  0x4d   : > { %s878_s7 = smov 4   ;;  %p1139_p10 = scmp.ne.s32.totalorder %s1135_s25, 0 }
  0x4e   : > { %652 = dma.hbm_to_vmem [thread:$0]  (!%p1138_p8), %s1010_s28, 1024, %s1015_s11, %s1017_s19, %s876_s21, %s877_s26, %s878_s7  }
  0x4f   : > { %215 = sbr.rel (%p1139_p10) target bundleno = 359 (0x167), region = 32  ;;  %p1140_p1 = scmp.ne.s32.totalorder (!%p1139_p10), %s1130_s20, 0 }
  0x56   : > { %837 = dma.done.wait (%p1140_p1), [#allocation4], 512  }
  0x57   : > { %839 = vsyncadd (%p1140_p1), [#allocation4], 4294966784  ;;  %s1052_s8 = sand.u32 1, %s854_s13   ;;  %p1141_p9 = scmp.ne.s32.totalorder %s1132_s22, 0 }
  0x58   : > { %s573_s6 = sshll.u32 %s1052_s8, 6  ;;  %s222_s9 = scalar_lea.sflag [#allocation7], %s1052_s8 }
  0x59   : > { %s225_s4 = scalar_lea.vmem [#allocation6], %s573_s6 }
  0x5a   : > { %841 = dma.done.wait (%p1141_p9), %s222_s9, 1024  }
  0x5b   : > { %843 = vsyncadd (%p1141_p9), %s222_s9, 4294966272  ;;  %v718_v0 = vld [vmem:[%s225_s4] sm:$0xff]   ;;  %v719_v1 = vld [vmem:[%s225_s4 + $0x8] sm:$0xff]   ;;  %p253_p8 = scmp.lt.s32.totalorder %s862_s15, 2  ;;  %s574_s22 = sshll.u32 %s1052_s8, 4 }
  0x5c   : > { %617 = vmatprep.subr.bf16.mxu0 %v718_v0  ;;  %v720_v2 = vld [vmem:[%s225_s4 + $0x10] sm:$0xff]   ;;  %v721_v3 = vld [vmem:[%s225_s4 + $0x18] sm:$0xff]   ;;  %v270_v4 = vld [vmem:[#allocation3] sm:$0xff]  ;;  %s250_s11 = scalar_lea.vmem [#allocation8], %s574_s22  ;;  %s589_s5 = sshll.u32 %s862_s15, 6 }
  0x5d   : > { %618 = vmatpush3.bf16.msra.mxu0 %v718_v0  ;;  %v271_v5 = vld [vmem:[#allocation3 + $0x8] sm:$0xff]  ;;  %v722_v7 = vld [vmem:[%s225_s4 + $0x20] sm:$0xff]   ;;  %v724_v9 = vld [vmem:[%s225_s4 + $0x30] sm:$0xff]   ;;  %s254_s20 = scalar_select %p253_p8, %s862_s15, 2 }
  0x5e   : > { %619 = vmatprep.subr.bf16.mxu0 %v719_v1  ;;  %v274_v6 = vpack.c.bf16 %v271_v5, %v270_v4  ;;  %v723_v8 = vld [vmem:[%s225_s4 + $0x28] sm:$0xff]   ;;  %v725_v10 = vld [vmem:[%s225_s4 + $0x38] sm:$0xff]   ;;  %v272_v11 = vld [vmem:[#allocation3 + $0x10] sm:$0xff]  ;;  %s451_s19 = sshll.u32 %s250_s11, 4  ;;  %s1072_s21 = scalar_lea.hbm %s1123_s3, %s589_s5  ;;  %s1067_s19 = int_to_ptr.vmem [resolvable:$true] %s451_s19 }
  0x5f   : > { %v273_v12 = vld [vmem:[#allocation3 + $0x18] sm:$0xff]  ;;  %s255_s28 = scalar_lea.vmem %s1122_s2, %s254_s20  ;;  %s436_s15 = scalar_lea.sflag [#allocation5], %s1052_s8 }
  0x60   : > { %633 = vmatprep.mubr.bf16.mxu0 %v274_v6  ;;  %v275_v13 = vpack.c.bf16 %v273_v12, %v272_v11  ;;  %v583_v15 = vld [vmem:[%s255_s28] ss:$0 sm:$0xff]  ;;  %s784_s26 = scalar_lea.vmem %s1067_s19, 256  ;;  %p1142_p4 = scmp.ne.s32.totalorder %s1133_s23, 0 }
  0x61   : > { %620 = vmatpush3.bf16.msra.mxu0 %v719_v1  ;;  %p785_p11 = scmp.ne.s32.totalorder %s1067_s19, %s784_s26  ;;  %s879_s7 = smov [#allocation8]  }
  0x62   : > { %621 = vmatprep.subr.bf16.mxu0 %v720_v2  ;;  %s788_s6 = sshll.u32 %s879_s7, 4  ;;  %s789_s6 = int_to_ptr.vmem [resolvable:$false] %s788_s6 }
  0x63   : > { %p786_p13 = pnand %p785_p11, %p1142_p4  ;;  %s790_s9 = scalar_lea.vmem %s789_s6, 512 }
  0x64   : > { %p791_p5 = scmp.lt.s32.totalorder %s1067_s19, %s789_s6  ;;  %p792_p3 = scmp.lt.s32.totalorder %s790_s9, %s784_s26 }
  0x65   : > { %622 = vmatpush3.bf16.msra.mxu0 %v720_v2  ;;  %p787_p0 = pneg %p786_p13 }
  0x66   : > { %623 = vmatprep.subr.bf16.mxu0 %v721_v3  ;;  %p793_p6 = por %p792_p3, %p791_p5 }
  0x68   : > { %p794_p12 = pnand %p793_p6, %p787_p0 }
  0x69   : > { %624 = vmatpush3.bf16.msra.mxu0 %v721_v3 }
  0x6a   : > { %625 = vmatprep.subr.bf16.mxu0 %v722_v7 }
  0x6d   : > { %626 = vmatpush3.bf16.msra.mxu0 %v722_v7 }
  0x6e   : > { %627 = vmatprep.subr.bf16.mxu0 %v723_v8 }
  0x71   : > { %628 = vmatpush3.bf16.msra.mxu0 %v723_v8 }
  0x72   : > { %629 = vmatprep.subr.bf16.mxu0 %v724_v9 }
  0x75   : > { %630 = vmatpush3.bf16.msra.mxu0 %v724_v9 }
  0x76   : > { %631 = vmatprep.subr.bf16.mxu0 %v725_v10 }
  0x79   : > { %632 = vmatpush3.bf16.msra.mxu0 %v725_v10 }
  0x7c   : > { %634 = vmatmul.mubr.bf16.vlgmr.msra.gmra.mrb[0].mxu0 %v275_v13 }
 0x14f   : > { %v635_v14 = vpop.f32.mrb[0].mxu0 }
 0x150   : > { %v374_v16 = vpop.f32.mrb[1].mxu0  ;;  %v413_v18 = vadd.f32 %v635_v14, %v583_v15 }
 0x151   : > { %v636_v17 = vpop.f32.mrb[2].mxu0  ;;  %v411_v21 = vadd.f32 %v583_v15, %v374_v16 }
 0x152   : > { %v414_v19 = vadd.f32 %v636_v17, %v583_v15  ;;  %v377_v20 = vpop.f32.mrb[3].mxu0 }
 0x153   : > { %v412_v22 = vadd.f32 %v583_v15, %v377_v20 }
 0x154   : > { %v604_v23 = vpack.c.bf16 %v414_v19, %v413_v18 }
 0x155   : > { %v599_v24 = vpack.c.bf16 %v412_v22, %v411_v21 }
 0x156   : > { %606 = vst [vmem:[%s250_s11 + $0x8] sm:$0xff] %v604_v23  }
 0x157   : > { %600 = vst [vmem:[%s250_s11] sm:$0xff] %v599_v24  }
 0x158   : > { %797 = shalt.err (!%p794_p12)
}
 0x159   : > { %s798_s4 = scalar_lea.hbm %s1072_s21, 256  ;;  %s802_s25 = scalar_lea.hbm %s1123_s3, 768 }
 0x15a   : > { %p799_p2 = scmp.ne.s32.totalorder %s1072_s21, %s798_s4  ;;  %p803_p1 = scmp.lt.u32.totalorder %s1072_s21, %s1123_s3 }
 0x15b   : > { %p804_p9 = scmp.lt.u32.totalorder %s802_s25, %s798_s4  ;;  %p806_p11 = scmp.lt.u32.totalorder %s798_s4, %s1072_s21 }
 0x15c   : > { %p800_p7 = pnand %p799_p2, %p1142_p4 }
 0x15d   : > { %p805_p8 = por %p804_p9, %p803_p1 }
 0x15e   : > { %p801_p10 = pneg %p800_p7 }
 0x15f   : > { %p807_p13 = por %p806_p11, %p805_p8 }
 0x161   : > { %p808_p0 = pnand %p807_p13, %p801_p10 }
 0x163   : > { %811 = shalt.err (!%p808_p0)
}
 0x164   : > { %s880_s11 = smov 64   ;;  %s881_s5 = smov 192  }
 0x165   : > { %s882_s10 = smov 4  }
 0x166   : > { %643 = dma.vmem_to_hbm [thread:$0]  (%p1142_p4), %s1067_s19, 256, %s1072_s21, %s436_s15, %s880_s11, %s881_s5, %s882_s10  }
 0x167 PF: > { %p660_p5 = scmp.ge.s32.totalorder %s870_s17, 2  ;;  %s466_s27 = sand.u32 1, %s850_s12  }
 0x168   : > { %p1143_p3 = scmp.ne.s32.totalorder %s1134_s24, 0  ;;  %s467_s26 = scalar_lea.sflag [#allocation5], %s466_s27 }
 0x16a   : > { %p654_p6 = pnand %p660_p5, %p1143_p3 }
 0x16c   : > { %845 = dma.done.wait (!%p654_p6), %s467_s26, 256  }
 0x16d   : > { %847 = vsyncadd (!%p654_p6), %s467_s26, 4294967040  ;;  %s20_s17 = sadd.s32 1, %s870_s17   ;;  %s1144_s12 = smov %s854_s13 }
 0x16e   : > { %p17_p12 = scmp.ge.s32.totalorder %s20_s17, 5   ;;  %s1145_s13 = smov %s858_s14 }
 0x16f   : > { %s1146_s14 = smov %s1013_s18  ;;  %s1147_s15 = smov %s866_s16 }
 0x170   : > { %s1148_s16 = smov %s1150_s30  ;;  %19 = sbr.rel (!%p17_p12) target bundleno = 7 (0x7), region = 94 }
 0x177   :  { %472 = vsyncpa [#allocation4], 1 }
 0x178   :  { %474 = vsyncpa [#allocation4 + $0x1], 1 }
 0x179   :  { %475 = vsyncpa [#allocation7], 1 }
 0x17a   :  { %477 = vsyncpa [#allocation7 + $0x1], 1 }
 0x17b   :  { %478 = vsyncpa [#allocation5], 1 }
 0x17c   :  { %480 = vsyncpa [#allocation5 + $0x1], 1 }

</bundles_post_ra>
